<compile_context>
chip_gen: v7x
topology: tpu7x:2x2x1
jax: 0.10.0
libtpu: 0.0.40
codegen_flags: <defaults>
</compile_context>

<pallas_src>
import functools

import jax
import jax.numpy as jnp
from jax.experimental import pallas as pl
from jax.experimental.pallas import tpu as pltpu

_LANE = 128
_SUBLANE = 8


def _round_up(x, m):
    return ((x + m - 1) // m) * m


def _cdiv(a, b):
    return -(-a // b)


def _conv_tile(x_ref, xh_ref, w_ref, *, kernel_size, dilation, tl, mxu_dtype):
    """Dilated conv for one (n_blk, tl) tile.

    x_ref : (n_blk, C_in, tl)  current lane tile of the zero-padded input
    xh_ref: (n_blk, C_in, hw)  halo: the next hw lanes of the padded input
    w_ref : (K, C_out, C_in)
    returns (n_blk, C_out, tl) float32
    """
    xcat = jnp.concatenate([x_ref[...], xh_ref[...]], axis=-1)    # (n, C_in, tl+hw)
    xcat = xcat.astype(mxu_dtype)
    n_blk = xcat.shape[0]
    c_out, c_in = w_ref.shape[1], w_ref.shape[2]
    acc = jnp.zeros((n_blk, c_out, tl), jnp.float32)
    for k in range(kernel_size):                                  # K static -> unrolled
        xk = jax.lax.slice_in_dim(xcat, k * dilation, k * dilation + tl, axis=2)
        wk = jnp.broadcast_to(w_ref[k].astype(mxu_dtype), (n_blk, c_out, c_in))
        acc = acc + jax.lax.dot_general(
            wk, xk,
            dimension_numbers=(((2,), (1,)), ((0,), (0,))),
            preferred_element_type=jnp.float32)                   # (n_blk, C_out, tl)
    return acc


def _conv_stats_kernel(x_ref, xh_ref, w_ref, stats_ref, *,
                       kernel_size, dilation, tl, n_blk, n_total, n_blocks,
                       n_tiles, l_out, mxu_dtype):
    """Pass 1: conv tile + per-N-block per-channel sum / sum-of-squares."""
    i = pl.program_id(0)
    t = pl.program_id(1)

    @pl.when(t == 0)
    def _():
        stats_ref[...] = jnp.zeros_like(stats_ref)

    conv = _conv_tile(x_ref, xh_ref, w_ref, kernel_size=kernel_size,
                      dilation=dilation, tl=tl, mxu_dtype=mxu_dtype)

    def _accum(c):
        s1 = jnp.sum(jnp.sum(c, axis=2, keepdims=True), axis=0)          # (C_out, 1)
        s2 = jnp.sum(jnp.sum(c * c, axis=2, keepdims=True), axis=0)      # (C_out, 1)
        stats_ref[...] += jnp.concatenate([s1, s2], axis=1)              # (C_out, 2)

    ragged_l = n_tiles * tl != l_out          # static
    ragged_n = n_blocks * n_blk != n_total    # static
    if not (ragged_l or ragged_n):
        _accum(conv)
        return

    # Only the boundary grid steps pay for the masking.
    pred = None
    if ragged_l:
        pred = t == n_tiles - 1
    if ragged_n:
        p = i == n_blocks - 1
        pred = p if pred is None else jnp.logical_or(pred, p)

    @pl.when(jnp.logical_not(pred))
    def _():
        _accum(conv)

    @pl.when(pred)
    def _():
        m = conv
        if ragged_l:
            lane = jax.lax.broadcasted_iota(jnp.int32, conv.shape, 2) + t * tl
            m = jnp.where(lane < l_out, m, 0.0)
        if ragged_n:
            row = jax.lax.broadcasted_iota(jnp.int32, conv.shape, 0) + i * n_blk
            m = jnp.where(row < n_total, m, 0.0)
        _accum(m)


def _conv_bn_relu_kernel(x_ref, xh_ref, w_ref, scale_ref, shift_ref, out_ref, *,
                         kernel_size, dilation, tl, mxu_dtype):
    """Pass 2: conv tile, folded BN affine, ReLU, lane-dense store."""
    conv = _conv_tile(x_ref, xh_ref, w_ref, kernel_size=kernel_size,
                      dilation=dilation, tl=tl, mxu_dtype=mxu_dtype)
    y = conv * scale_ref[...] + shift_ref[...]                    # (n_blk, C_out, tl)
    out_ref[...] = jnp.maximum(y, 0.0).astype(out_ref.dtype)


def block_fcn_conv(x_ncl, weight, bias, gamma, beta, *, kernel_size, dilation,
                   eps=1e-3, out_dtype=jnp.float32, mxu_dtype=jnp.float32,
                   vmem_budget_bytes=20 * 1024 * 1024, max_tile_l=8192,
                   tile_l=None, n_block=None):
    """x_ncl: (N, C_in, L), weight: (C_out, C_in, K) (PyTorch layouts).
       Returns (N, C_out, L_out) in out_dtype — training-mode BN batch stats."""
    # Conv bias cancels exactly: BN (batch statistics) subtracts the batch mean
    # of this conv's output immediately, and Var(x + b) == Var(x).  If the
    # module were run with eval/running statistics the bias must be re-added.
    del bias

    n, c_in, length = x_ncl.shape
    c_out = weight.shape[0]
    pad = (dilation * (kernel_size - 1)) // 2
    halo = dilation * (kernel_size - 1)
    l_out = length + 2 * pad - halo
    assert l_out > 0, "conv output length must be positive"

    # ---- Tile-size selection --------------------------------------------------
    hw = max(_LANE, _round_up(halo, _LANE))               # halo view width (lanes)
    cin_p = _round_up(c_in, _SUBLANE)
    cout_p = _round_up(c_out, _SUBLANE)
    # Rough VMEM bytes per n_blk*tl "column": double-buffered x + out blocks,
    # xcat / tap-slice intermediates, f32 accumulator (sublane padding included).
    bytes_per_col = 4 * (5 * cin_p + 6 * cout_p)
    target_cols = max(hw, vmem_budget_bytes // bytes_per_col)

    if tile_l is None:
        tl = min(_round_up(l_out, hw),
                 _round_up(min(max_tile_l, target_cols), hw))
    else:
        tl = _round_up(max(tile_l, hw), hw)
        tl = min(tl, _round_up(l_out, hw))
    n_tiles = _cdiv(l_out, tl)
    tl = _round_up(_cdiv(l_out, n_tiles), hw)              # balance L tiles
    n_tiles = _cdiv(l_out, tl)

    if n_block is None:
        n_blk = min(n, max(1, target_cols // tl))
    else:
        n_blk = max(1, min(n, n_block))
    n_blocks = _cdiv(n, n_blk)
    n_blk = _cdiv(n, n_blocks)                             # balance N blocks
    n_blocks = _cdiv(n, n_blk)

    # ---- Glue: minimal zero-pad of L + tiny weight relayout --------------------
    # TODO(synk): fold this pad in-kernel (element-offset BlockSpecs) to remove
    # the remaining extra read+write of x.
    lx = n_tiles * tl + hw
    x_pad = jnp.pad(x_ncl, ((0, 0), (0, 0), (pad, lx - pad - length)))
    w_koi = jnp.transpose(weight, (2, 0, 1)).astype(jnp.float32)   # (K, C_out, C_in)

    x_cur_spec = pl.BlockSpec((n_blk, c_in, tl), lambda i, t: (i, 0, t))
    x_halo_spec = pl.BlockSpec((n_blk, c_in, hw),
                               lambda i, t: (i, 0, (t + 1) * (tl // hw)))
    w_spec = pl.BlockSpec((kernel_size, c_out, c_in), lambda i, t: (0, 0, 0))
    grid = (n_blocks, n_tiles)
    vmem_limit = 32 * 1024 * 1024

    # ---- Pass 1: conv + per-N-block sufficient statistics ----------------------
    stats_parts = pl.pallas_call(
        functools.partial(_conv_stats_kernel, kernel_size=kernel_size,
                          dilation=dilation, tl=tl, n_blk=n_blk, n_total=n,
                          n_blocks=n_blocks, n_tiles=n_tiles, l_out=l_out,
                          mxu_dtype=mxu_dtype),
        out_shape=jax.ShapeDtypeStruct((n_blocks, c_out, 2), jnp.float32),
        grid=grid,
        in_specs=[x_cur_spec, x_halo_spec, w_spec],
        out_specs=pl.BlockSpec((None, c_out, 2), lambda i, t: (i, 0, 0)),
        compiler_params=pltpu.CompilerParams(
            dimension_semantics=("parallel", "arbitrary"),
            vmem_limit_bytes=vmem_limit),
    )(x_pad, x_pad, w_koi)

    # Tiny per-channel glue: fold batch mean/var + gamma/beta into scale/shift.
    # TODO(synk): one-pass E[x^2]-E[x]^2 can cancel when |mean| >> std; a third
    # (mean-first) pass would fix it at the cost of one extra read of x.
    stats = jnp.sum(stats_parts, axis=0)                    # (C_out, 2)
    cnt = jnp.float32(n * l_out)
    mean = stats[:, 0] / cnt
    var = jnp.maximum(stats[:, 1] / cnt - mean * mean, 0.0)
    scale = gamma.astype(jnp.float32) * jax.lax.rsqrt(var + eps)
    shift = beta.astype(jnp.float32) - mean * scale
    scale2 = scale.reshape(c_out, 1)
    shift2 = shift.reshape(c_out, 1)

    # ---- Pass 2: conv (recomputed) + folded BN affine + ReLU -------------------
    # Output written directly at (N, C_out, L_out): the ragged final L / N
    # blocks are masked on writeback by Pallas (no wrapper slice).
    return pl.pallas_call(
        functools.partial(_conv_bn_relu_kernel, kernel_size=kernel_size,
                          dilation=dilation, tl=tl, mxu_dtype=mxu_dtype),
        out_shape=jax.ShapeDtypeStruct((n, c_out, l_out), out_dtype),
        grid=grid,
        in_specs=[x_cur_spec, x_halo_spec, w_spec,
                  pl.BlockSpec((c_out, 1), lambda i, t: (0, 0)),
                  pl.BlockSpec((c_out, 1), lambda i, t: (0, 0))],
        out_specs=pl.BlockSpec((n_blk, c_out, tl), lambda i, t: (i, 0, t)),
        compiler_params=pltpu.CompilerParams(
            dimension_semantics=("parallel", "parallel"),
            vmem_limit_bytes=vmem_limit),
    )(x_pad, x_pad, w_koi, scale2, shift2)


def _reference(x_ncl, weight, bias, gamma, beta, *, kernel_size, dilation, eps):
    pad = (dilation * (kernel_size - 1)) // 2
    conv = jax.lax.conv_general_dilated(
        x_ncl, weight, window_strides=(1,), padding=[(pad, pad)],
        rhs_dilation=(dilation,),
        dimension_numbers=("NCH", "OIH", "NCH")) + bias[None, :, None]
    mean = jnp.mean(conv, axis=(0, 2), keepdims=True)
    var = jnp.mean((conv - mean) ** 2, axis=(0, 2), keepdims=True)
    xhat = (conv - mean) / jnp.sqrt(var + eps)
    return jnp.maximum(xhat * gamma[None, :, None] + beta[None, :, None], 0.0)


if __name__ == "__main__":
    def run_case(key, *, n, c_in, c_out, length, kernel_size, dilation, eps,
                 **kw):
        kx, kw_, kb, kg, kbe = jax.random.split(key, 5)
        x = jax.random.normal(kx, (n, c_in, length), dtype=jnp.float32)
        fan_in = c_in * kernel_size
        bound = 1.0 / (fan_in ** 0.5)
        weight = jax.random.uniform(kw_, (c_out, c_in, kernel_size),
                                    minval=-bound, maxval=bound,
                                    dtype=jnp.float32)
        bias = jax.random.uniform(kb, (c_out,), minval=-bound, maxval=bound,
                                  dtype=jnp.float32)
        gamma = 1.0 + 0.1 * jax.random.normal(kg, (c_out,), dtype=jnp.float32)
        beta = 0.1 * jax.random.normal(kbe, (c_out,), dtype=jnp.float32)

        y = block_fcn_conv(x, weight, bias, gamma, beta,
                           kernel_size=kernel_size, dilation=dilation,
                           eps=eps, **kw)
        y = jax.block_until_ready(y)
        y_ref = _reference(x, weight, bias, gamma, beta,
                           kernel_size=kernel_size, dilation=dilation, eps=eps)
        assert y.shape == y_ref.shape, (y.shape, y_ref.shape)
        err = float(jnp.max(jnp.abs(y - y_ref)))
        assert jnp.allclose(y, y_ref, atol=1e-4, rtol=1e-4), err

    key = jax.random.PRNGKey(0)
    k1, k2, k3 = jax.random.split(key, 3)
    # Small case matching BlockFCNConv defaults (single L tile, auto tiling).
    run_case(k1, n=2, c_in=4, c_out=8, length=16, kernel_size=3, dilation=1,
             eps=1e-3)
    # Multi-tile + dilated case with ragged N and ragged L (forced small tiles)
    # to exercise the halo, the boundary masking and the masked writebacks.
    run_case(k2, n=3, c_in=4, c_out=8, length=300, kernel_size=5, dilation=2,
             eps=1e-3, tile_l=128, n_block=2)
    # Even kernel (asymmetric effective padding), wider C_out, auto tiling.
    run_case(k3, n=4, c_in=4, c_out=16, length=64, kernel_size=8, dilation=1,
             eps=1e-3)
    print("KERNEL_OK")
</pallas_src>

<mosaic_0001>
module attributes {stable_mosaic.version = 11 : i64} {
  func.func @_conv_stats_kernel(%arg0: i32, %arg1: i32, %arg2: memref<2x4x128xf32, #tpu.memory_space<vmem>>, %arg3: memref<2x4x128xf32, #tpu.memory_space<vmem>>, %arg4: memref<3x8x4xf32, #tpu.memory_space<vmem>>, %arg5: memref<1x8x2xf32, #tpu.memory_space<vmem>>) attributes {dimension_semantics = [#tpu.dimension_semantics<parallel>, #tpu.dimension_semantics<arbitrary>], iteration_bounds = array<i64: 1, 1>, scalar_prefetch = 0 : i64, scratch_operands = 0 : i64, tpu.core_type = #tpu.core_type<tc>, window_params = [{transform_indices = @transform_0, window_bounds = array<i64: 2, 4, 128>}, {transform_indices = @transform_1, window_bounds = array<i64: 2, 4, 128>}, {pipeline_mode = #tpu.pipeline_mode<synchronous>, transform_indices = @transform_2, window_bounds = array<i64: 3, 8, 4>}, {transform_indices = @transform_3, window_bounds = array<i64: 1, 8, 2>}]} {
    %c0_i32 = arith.constant 0 : i32
    %0 = arith.cmpi eq, %arg1, %c0_i32 : i32
    %1 = arith.extui %0 : i1 to i32
    %c0_i32_0 = arith.constant 0 : i32
    %2 = arith.cmpi ne, %1, %c0_i32_0 : i32
    scf.if %2 {
      %cst_19 = arith.constant 0.000000e+00 : f32
      %34 = vector.broadcast %cst_19 : f32 to vector<8x2xf32>
      %c0_20 = arith.constant 0 : index
      %c0_21 = arith.constant 0 : index
      %c0_22 = arith.constant 0 : index
      %35 = vector.load %arg5[%c0_20, %c0_21, %c0_22] : memref<1x8x2xf32, #tpu.memory_space<vmem>>, vector<1x8x2xf32>
      %36 = vector.shape_cast %35 : vector<1x8x2xf32> to vector<8x2xf32>
      %37 = vector.shape_cast %34 : vector<8x2xf32> to vector<1x8x2xf32>
      tpu.vector_store %arg5[%c0_20, %c0_21, %c0_22], %37 {strides = array<i32>} : memref<1x8x2xf32, #tpu.memory_space<vmem>>, vector<1x8x2xf32>,
    } else {
    }
    %c0 = arith.constant 0 : index
    %c0_1 = arith.constant 0 : index
    %c0_2 = arith.constant 0 : index
    %3 = vector.load %arg2[%c0, %c0_1, %c0_2] : memref<2x4x128xf32, #tpu.memory_space<vmem>>, vector<2x4x128xf32>
    %c0_3 = arith.constant 0 : index
    %c0_4 = arith.constant 0 : index
    %c0_5 = arith.constant 0 : index
    %4 = vector.load %arg3[%c0_3, %c0_4, %c0_5] : memref<2x4x128xf32, #tpu.memory_space<vmem>>, vector<2x4x128xf32>
    %5 = tpu.concatenate %3, %4 in 2 : vector<2x4x128xf32>, vector<2x4x128xf32> -> vector<2x4x256xf32>
    %cst = arith.constant 0.000000e+00 : f32
    %6 = vector.broadcast %cst : f32 to vector<2x8x128xf32>
    %7 = vector.extract_strided_slice %5 {offsets = [0, 0, 0], sizes = [2, 4, 128], strides = [1, 1, 1]} : vector<2x4x256xf32> to vector<2x4x128xf32>
    %c0_6 = arith.constant 0 : index
    %c0_7 = arith.constant 0 : index
    %c0_8 = arith.constant 0 : index
    %8 = vector.load %arg4[%c0_6, %c0_7, %c0_8] : memref<3x8x4xf32, #tpu.memory_space<vmem>>, vector<1x8x4xf32>
    %9 = vector.shape_cast %8 : vector<1x8x4xf32> to vector<8x4xf32>
    %10 = vector.shape_cast %9 : vector<8x4xf32> to vector<1x8x4xf32>
    %11 = vector.broadcast %10 : vector<1x8x4xf32> to vector<2x8x4xf32>
    %cst_9 = arith.constant dense<0.000000e+00> : vector<2x8x128xf32>
    %12 = tpu.matmul %11, %7, %cst_9 {dimension_numbers = #tpu.dot_dimension_numbers<[2], [1], [1], [2], [0, 0, 0, 1, 1, 2], [0], [0]>} : vector<2x8x4xf32>, vector<2x4x128xf32>, vector<2x8x128xf32> -> vector<2x8x128xf32>
    %13 = arith.addf %6, %12 : vector<2x8x128xf32>
    %14 = vector.extract_strided_slice %5 {offsets = [0, 0, 1], sizes = [2, 4, 128], strides = [1, 1, 1]} : vector<2x4x256xf32> to vector<2x4x128xf32>
    %c1 = arith.constant 1 : index
    %c0_10 = arith.constant 0 : index
    %c0_11 = arith.constant 0 : index
    %15 = vector.load %arg4[%c1, %c0_10, %c0_11] : memref<3x8x4xf32, #tpu.memory_space<vmem>>, vector<1x8x4xf32>
    %16 = vector.shape_cast %15 : vector<1x8x4xf32> to vector<8x4xf32>
    %17 = vector.shape_cast %16 : vector<8x4xf32> to vector<1x8x4xf32>
    %18 = vector.broadcast %17 : vector<1x8x4xf32> to vector<2x8x4xf32>
    %cst_12 = arith.constant dense<0.000000e+00> : vector<2x8x128xf32>
    %19 = tpu.matmul %18, %14, %cst_12 {dimension_numbers = #tpu.dot_dimension_numbers<[2], [1], [1], [2], [0, 0, 0, 1, 1, 2], [0], [0]>} : vector<2x8x4xf32>, vector<2x4x128xf32>, vector<2x8x128xf32> -> vector<2x8x128xf32>
    %20 = arith.addf %13, %19 : vector<2x8x128xf32>
    %21 = vector.extract_strided_slice %5 {offsets = [0, 0, 2], sizes = [2, 4, 128], strides = [1, 1, 1]} : vector<2x4x256xf32> to vector<2x4x128xf32>
    %c2 = arith.constant 2 : index
    %c0_13 = arith.constant 0 : index
    %c0_14 = arith.constant 0 : index
    %22 = vector.load %arg4[%c2, %c0_13, %c0_14] : memref<3x8x4xf32, #tpu.memory_space<vmem>>, vector<1x8x4xf32>
    %23 = vector.shape_cast %22 : vector<1x8x4xf32> to vector<8x4xf32>
    %24 = vector.shape_cast %23 : vector<8x4xf32> to vector<1x8x4xf32>
    %25 = vector.broadcast %24 : vector<1x8x4xf32> to vector<2x8x4xf32>
    %cst_15 = arith.constant dense<0.000000e+00> : vector<2x8x128xf32>
    %26 = tpu.matmul %25, %21, %cst_15 {dimension_numbers = #tpu.dot_dimension_numbers<[2], [1], [1], [2], [0, 0, 0, 1, 1, 2], [0], [0]>} : vector<2x8x4xf32>, vector<2x4x128xf32>, vector<2x8x128xf32> -> vector<2x8x128xf32>
    %27 = arith.addf %20, %26 : vector<2x8x128xf32>
    %c0_i32_16 = arith.constant 0 : i32
    %28 = arith.cmpi eq, %arg1, %c0_i32_16 : i32
    %true = arith.constant true
    %29 = arith.xori %28, %true : i1
    %30 = arith.extui %29 : i1 to i32
    %c0_i32_17 = arith.constant 0 : i32
    %31 = arith.cmpi ne, %30, %c0_i32_17 : i32
    scf.if %31 {
      %cst_19 = arith.constant dense<0.000000e+00> : vector<2x8xf32>
      %34 = vector.multi_reduction <add>, %27, %cst_19 [2] : vector<2x8x128xf32> to vector<2x8xf32>
      %35 = vector.shape_cast %34 : vector<2x8xf32> to vector<2x8x1xf32>
      %cst_20 = arith.constant dense<0.000000e+00> : vector<8x1xf32>
      %36 = vector.multi_reduction <add>, %35, %cst_20 [0] : vector<2x8x1xf32> to vector<8x1xf32>
      %37 = arith.mulf %27, %27 : vector<2x8x128xf32>
      %cst_21 = arith.constant dense<0.000000e+00> : vector<2x8xf32>
      %38 = vector.multi_reduction <add>, %37, %cst_21 [2] : vector<2x8x128xf32> to vector<2x8xf32>
      %39 = vector.shape_cast %38 : vector<2x8xf32> to vector<2x8x1xf32>
      %cst_22 = arith.constant dense<0.000000e+00> : vector<8x1xf32>
      %40 = vector.multi_reduction <add>, %39, %cst_22 [0] : vector<2x8x1xf32> to vector<8x1xf32>
      %c0_23 = arith.constant 0 : index
      %c0_24 = arith.constant 0 : index
      %c0_25 = arith.constant 0 : index
      %41 = vector.load %arg5[%c0_23, %c0_24, %c0_25] : memref<1x8x2xf32, #tpu.memory_space<vmem>>, vector<1x8x2xf32>
      %42 = vector.shape_cast %41 : vector<1x8x2xf32> to vector<8x2xf32>
      %43 = tpu.concatenate %36, %40 in 1 : vector<8x1xf32>, vector<8x1xf32> -> vector<8x2xf32>
      %44 = arith.addf %42, %43 : vector<8x2xf32>
      %c0_26 = arith.constant 0 : index
      %c0_27 = arith.constant 0 : index
      %c0_28 = arith.constant 0 : index
      %45 = vector.load %arg5[%c0_26, %c0_27, %c0_28] : memref<1x8x2xf32, #tpu.memory_space<vmem>>, vector<1x8x2xf32>
      %46 = vector.shape_cast %45 : vector<1x8x2xf32> to vector<8x2xf32>
      %47 = vector.shape_cast %44 : vector<8x2xf32> to vector<1x8x2xf32>
      tpu.vector_store %arg5[%c0_26, %c0_27, %c0_28], %47 {strides = array<i32>} : memref<1x8x2xf32, #tpu.memory_space<vmem>>, vector<1x8x2xf32>,
    } else {
    }
    %32 = arith.extui %28 : i1 to i32
    %c0_i32_18 = arith.constant 0 : i32
    %33 = arith.cmpi ne, %32, %c0_i32_18 : i32
    scf.if %33 {
      %34 = tpu.iota {dimensions = array<i32: 2>} : vector<2x8x128xi32>
      %c128_i32 = arith.constant 128 : i32
      %35 = arith.muli %arg1, %c128_i32 : i32
      %36 = vector.broadcast %35 : i32 to vector<2x8x128xi32>
      %37 = arith.addi %34, %36 : vector<2x8x128xi32>
      %c16_i32 = arith.constant 16 : i32
      %38 = vector.broadcast %c16_i32 : i32 to vector<2x8x128xi32>
      %39 = arith.cmpi slt, %37, %38 : vector<2x8x128xi32>
      %cst_19 = arith.constant 0.000000e+00 : f32
      %40 = vector.broadcast %cst_19 : f32 to vector<2x8x128xf32>
      %41 = arith.select %39, %27, %40 : vector<2x8x128xi1>, vector<2x8x128xf32>
      %cst_20 = arith.constant dense<0.000000e+00> : vector<2x8xf32>
      %42 = vector.multi_reduction <add>, %41, %cst_20 [2] : vector<2x8x128xf32> to vector<2x8xf32>
      %43 = vector.shape_cast %42 : vector<2x8xf32> to vector<2x8x1xf32>
      %cst_21 = arith.constant dense<0.000000e+00> : vector<8x1xf32>
      %44 = vector.multi_reduction <add>, %43, %cst_21 [0] : vector<2x8x1xf32> to vector<8x1xf32>
      %45 = arith.mulf %41, %41 : vector<2x8x128xf32>
      %cst_22 = arith.constant dense<0.000000e+00> : vector<2x8xf32>
      %46 = vector.multi_reduction <add>, %45, %cst_22 [2] : vector<2x8x128xf32> to vector<2x8xf32>
      %47 = vector.shape_cast %46 : vector<2x8xf32> to vector<2x8x1xf32>
      %cst_23 = arith.constant dense<0.000000e+00> : vector<8x1xf32>
      %48 = vector.multi_reduction <add>, %47, %cst_23 [0] : vector<2x8x1xf32> to vector<8x1xf32>
      %c0_24 = arith.constant 0 : index
      %c0_25 = arith.constant 0 : index
      %c0_26 = arith.constant 0 : index
      %49 = vector.load %arg5[%c0_24, %c0_25, %c0_26] : memref<1x8x2xf32, #tpu.memory_space<vmem>>, vector<1x8x2xf32>
      %50 = vector.shape_cast %49 : vector<1x8x2xf32> to vector<8x2xf32>
      %51 = tpu.concatenate %44, %48 in 1 : vector<8x1xf32>, vector<8x1xf32> -> vector<8x2xf32>
      %52 = arith.addf %50, %51 : vector<8x2xf32>
      %c0_27 = arith.constant 0 : index
      %c0_28 = arith.constant 0 : index
      %c0_29 = arith.constant 0 : index
      %53 = vector.load %arg5[%c0_27, %c0_28, %c0_29] : memref<1x8x2xf32, #tpu.memory_space<vmem>>, vector<1x8x2xf32>
      %54 = vector.shape_cast %53 : vector<1x8x2xf32> to vector<8x2xf32>
      %55 = vector.shape_cast %52 : vector<8x2xf32> to vector<1x8x2xf32>
      tpu.vector_store %arg5[%c0_27, %c0_28, %c0_29], %55 {strides = array<i32>} : memref<1x8x2xf32, #tpu.memory_space<vmem>>, vector<1x8x2xf32>,
    } else {
    }
    return
  }
  func.func @transform_0(%arg0: i32, %arg1: i32) -> (i32, i32, i32) {
    %c0_i32 = arith.constant 0 : i32
    %c0_i32_0 = arith.constant 0 : i32
    return %arg0, %c0_i32, %arg1 : i32, i32, i32
  }
  func.func @transform_1(%arg0: i32, %arg1: i32) -> (i32, i32, i32) {
    %c1_i32 = arith.constant 1 : i32
    %0 = arith.addi %arg1, %c1_i32 : i32
    %c1_i32_0 = arith.constant 1 : i32
    %1 = arith.muli %0, %c1_i32_0 : i32
    %c0_i32 = arith.constant 0 : i32
    %c0_i32_1 = arith.constant 0 : i32
    return %arg0, %c0_i32, %1 : i32, i32, i32
  }
  func.func @transform_2(%arg0: i32, %arg1: i32) -> (i32, i32, i32) {
    %c0_i32 = arith.constant 0 : i32
    %c0_i32_0 = arith.constant 0 : i32
    %c0_i32_1 = arith.constant 0 : i32
    %c0_i32_2 = arith.constant 0 : i32
    return %c0_i32, %c0_i32_0, %c0_i32_1 : i32, i32, i32
  }
  func.func @transform_3(%arg0: i32, %arg1: i32) -> (i32, i32, i32) {
    %c0_i32 = arith.constant 0 : i32
    %c0_i32_0 = arith.constant 0 : i32
    %c0_i32_1 = arith.constant 0 : i32
    return %arg0, %c0_i32, %c0_i32_0 : i32, i32, i32
  }
}

</mosaic_0001>

<bundles_post_ra>
// kernel: tpu_custom_call.1
= control target key start
LH: loop header
LB: loop body
LE: loop exit
PB: predicated region body
PF: predicated region fallthrough
CT: control target
= control target key end

     0   :  { %v728_v4 = vmov 0.0   ;;  %vm729_vm0 = vmmov 0   ;;  %vm127_vm1 = vcmask 1039360   ;;  %vm133_vm2 = vcmask 1043456   ;;  %s813_s0 = inlined_call_operand.vmem [shape: f32[2,4,256], index: 0, kind: input, shape index: {}]   ;;  %s814_s1 = inlined_call_operand.vmem [shape: f32[2,4,256], index: 1, kind: input, shape index: {}]   ;;  %s815_s2 = inlined_call_operand.vmem [shape: f32[3,8,4], index: 2, kind: input, shape index: {}]   ;;  %s816_s3 = inlined_call_operand.vmem [shape: f32[1,8,2], index: 3, kind: output, shape index: {}]  }
   0x1   :  { %v27_v0 = vld [vmem:[%s813_s0 + $0x8] sm:$0xf]  ;;  %v25_v1 = vld [vmem:[%s813_s0] sm:$0xf]  ;;  %v659_v2 = vld [vmem:[%s814_s1 + $0xc] sm:$0xf]  ;;  %686 = vmatprep.subr.mxu0 %v728_v4  ;;  %691 = vmatprep.subr.mxu1 %v728_v4  ;;  %v619_v24 = vlaneseq }
   0x2   :  { %28 = vst [vmem:[#allocation2 + $0x4] sm:$0xf] %v27_v0  ;;  %26 = vst [vmem:[#allocation2] sm:$0xf] %v25_v1  ;;  %v658_v3 = vld [vmem:[%s814_s1 + $0x4] sm:$0xf]  ;;  %688 = vmatprep.mubr.msk.f32.mxu0 %vm729_vm0, %v728_v4  ;;  %693 = vmatprep.mubr.msk.f32.mxu1 %vm729_vm0, %v728_v4 }
   0x3   :  { %76 = vst [vmem:[#allocation3 + $0x4] sm:$0xf] %v659_v2  ;;  %74 = vst [vmem:[#allocation3] sm:$0xf] %v658_v3  ;;  %s730_s0 = smov 127   ;;  %s731_s1 = smov 126  }
   0x4   :  { %v660_v13 = vld [vmem:[%s815_s2 + $0x8] sm:$0xff]  ;;  %vm129_vm3 = vcmask 31744   ;;  %vm438_vm4 = vcmask 1031168   ;;  %v118_v18 = vld [vmem:[%s815_s2] sm:$0xff]  ;;  %v669_v23 = vld [vmem:[%s815_s2 + $0x10] sm:$0xff]  ;;  %v620_v25 = vand.u32 127, %v619_v24 }
   0x5   :  { %vm112_vm6 = vcmask 15360   ;;  %vm640_vm7 = vcmask 7168  }
   0x6   :  { %vm624_vm5 = vcmp.lt.s32.totalorder %v620_v25, 16  ;;  %113 = vst.msk [vmem:[%s816_s3] sm:$0xff] %vm112_vm6, %v728_v4 }
   0x9   :  { %v115_v5 = vld [vmem:[#allocation2 + $0x4] sm:$0xf]  ;;  %v114_v6 = vld [vmem:[#allocation2] sm:$0xf] }
   0xa   :  { %208 = vrot.lane.b32.xlu1 %v115_v5, %s730_s0  ;;  %123 = vrot.lane.b32.xlu0 %v114_v6, %s730_s0  ;;  %v117_v7 = vld [vmem:[#allocation3 + $0x4] sm:$0xf]  ;;  %v116_v8 = vld [vmem:[#allocation3] sm:$0xf] }
   0xd   :  { %v639_v39 = vld [vmem:[%s816_s3] sm:$0xff] }
   0xe   :  { %210 = vrot.lane.b32.xlu1 %v117_v7, %s730_s0  ;;  %125 = vrot.lane.b32.xlu0 %v116_v8, %s730_s0 }
  0x12   :  { %436 = vrot.lane.b32.xlu1 %v116_v8, %s731_s1  ;;  %434 = vrot.lane.b32.xlu0 %v114_v6, %s731_s1 }
  0x16   :  { %517 = vrot.lane.b32.xlu1 %v117_v7, %s731_s1  ;;  %515 = vrot.lane.b32.xlu0 %v115_v5, %s731_s1 }
  0x7c   :  { %v209_v9 = vpop.permute.xlu1 %208  ;;  %v124_v10 = vpop.permute.xlu0 %123 }
  0x80   :  { %v211_v11 = vpop.permute.xlu1 %210  ;;  %v126_v12 = vpop.permute.xlu0 %125 }
  0x81   :  { %v128_v14 = vsel %vm127_vm1, %v124_v10, %v126_v12  ;;  %v212_v15 = vsel %vm127_vm1, %v209_v9, %v211_v11 }
  0x82   :  { %687 = vmatpush3.msk.msra.mxu0 %vm133_vm2, %v128_v14  ;;  %692 = vmatpush3.msk.msra.mxu1 %vm133_vm2, %v212_v15 }
  0x83   :  { %689 = vmatmul.mubr.msk.f32.vlgmr.msra.gmra.mrb[0].mxu0 %vm129_vm3, %v660_v13  ;;  %694 = vmatmul.mubr.msk.f32.vlgmr.msra.gmra.mrb[0].mxu1 %vm129_vm3, %v660_v13 }
  0x84   :  { %696 = vmatprep.subr.mxu0 %v728_v4  ;;  %701 = vmatprep.subr.mxu1 %v728_v4  ;;  %v437_v16 = vpop.permute.xlu1 %436  ;;  %v435_v17 = vpop.permute.xlu0 %434 }
  0x85   :  { %697 = vmatpush3.msk.msra.mxu0 %vm133_vm2, %v114_v6  ;;  %702 = vmatpush3.msk.msra.mxu1 %vm133_vm2, %v115_v5  ;;  %v439_v21 = vsel %vm438_vm4, %v435_v17, %v437_v16 }
  0x86   :  { %703 = vmatprep.mubr.msk.f32.mxu1 %vm729_vm0, %v728_v4  ;;  %698 = vmatprep.mubr.msk.f32.mxu0 %vm729_vm0, %v728_v4 }
  0x87   :  { %706 = vmatprep.subr.mxu0 %v728_v4  ;;  %711 = vmatprep.subr.mxu1 %v728_v4 }
  0x88   :  { %v518_v19 = vpop.permute.xlu1 %517  ;;  %v516_v20 = vpop.permute.xlu0 %515 }
  0x89   :  { %v519_v22 = vsel %vm438_vm4, %v516_v20, %v518_v19 }
  0x8b   :  { %699 = vmatmul.mubr.msk.f32.vlgmr.msra.gmra.mrb[0].mxu0 %vm129_vm3, %v118_v18  ;;  %704 = vmatmul.mubr.msk.f32.vlgmr.msra.gmra.mrb[0].mxu1 %vm129_vm3, %v118_v18 }
  0x8c   :  { %707 = vmatpush3.msk.msra.mxu0 %vm133_vm2, %v439_v21  ;;  %708 = vmatprep.mubr.msk.f32.mxu0 %vm729_vm0, %v728_v4 }
  0x8d   :  { %712 = vmatpush3.msk.msra.mxu1 %vm133_vm2, %v519_v22  ;;  %713 = vmatprep.mubr.msk.f32.mxu1 %vm729_vm0, %v728_v4 }
  0x93   :  { %709 = vmatmul.mubr.msk.f32.vlgmr.msra.gmra.mrb[0].mxu0 %vm129_vm3, %v669_v23  ;;  %714 = vmatmul.mubr.msk.f32.vlgmr.msra.gmra.mrb[0].mxu1 %vm129_vm3, %v669_v23 }
 0x166   :  { %v511_v26 = vpop.f32.mrb[0].mxu0  ;;  %v588_v27 = vpop.f32.mrb[0].mxu1 }
 0x167   :  { %v710_v28 = vpop.f32.mrb[1].mxu0  ;;  %v715_v29 = vpop.f32.mrb[1].mxu1  ;;  %v625_v30 = vsel %vm624_vm5, %v511_v26, 0.0  ;;  %v626_v31 = vsel %vm624_vm5, %v588_v27, 0.0 }
 0x168   :  { %627 = vadd.xlane.f32.xlu0 %v625_v30  ;;  %629 = vadd.xlane.f32.xlu1 %v626_v31  ;;  %v632_v32 = vmul.f32 %v625_v30, %v625_v30  ;;  %v633_v33 = vmul.f32 %v626_v31, %v626_v31 }
 0x16c   :  { %634 = vadd.xlane.f32.xlu0 %v632_v32 }
 0x170   :  { %636 = vadd.xlane.f32.xlu0 %v633_v33 }
 0x1f5   :  { %v628_v34 = vpop.xlane.xlu0 %627  ;;  %v630_v36 = vpop.xlane.xlu1 %629 }
 0x1f6   :  { %v631_v38 = vadd.f32 %v630_v36, %v628_v34 }
 0x1f9   :  { %v635_v35 = vpop.xlane.xlu0 %634 }
 0x1fd   :  { %v637_v37 = vpop.xlane.xlu0 %636 }
 0x1fe   :  { %v638_v40 = vadd.f32 %v637_v37, %v635_v35 }
 0x200   :  { %v641_v41 = vsel %vm640_vm7, %v631_v38, %v638_v40 }
 0x201   :  { %v642_v42 = vadd.f32 %v641_v41, %v639_v39 }
 0x203   :  { %644 = vst.msk [vmem:[%s816_s3] sm:$0xff] %vm112_vm6, %v642_v42 }

</bundles_post_ra>
